<compile_context>
chip_gen: v6e
topology: v6e:2x2x1
jax: 0.10.0
libtpu: 0.0.40
codegen_flags: <defaults>
</compile_context>

<pallas_src>
import math

import jax
import jax.numpy as jnp
from jax.experimental import pallas as pl
from jax.experimental.pallas import tpu as pltpu

_SQRT_2_OVER_PI = math.sqrt(2.0 / math.pi)
# Minimum second-minor (sublane) block multiple per element size.
_SUBLANE_MULT = {1: 32, 2: 16, 4: 8, 8: 8}
# Lane widths tried when re-slabbing a flattened array (multiples of 128).
_LANE_CANDIDATES = (4096, 2048, 1024, 512, 384, 256, 128)


def _gelu_kernel(x_ref, o_ref):
    # Compute in f32 (matches PyTorch opmath for half dtypes; no-op for f32).
    # TODO(synk): float64 inputs (x64 mode) are computed in float32 here.
    x = x_ref[...].astype(jnp.float32)
    inner = _SQRT_2_OVER_PI * (x + 0.044715 * (x * x * x))
    y = 0.5 * x * (1.0 + jnp.tanh(inner))
    o_ref[...] = y.astype(o_ref.dtype)


def _target_block_bytes():
    """Per-generation block-byte target (HBM roofline vs grid overhead)."""
    kind = ""
    try:
        kind = jax.devices()[0].device_kind.lower()
    except Exception:
        pass
    if " v2" in kind or " v3" in kind or kind.endswith("v2") or kind.endswith("v3"):
        return 1 << 20          # tiny physical VMEM on old chips
    if "v5 lite" in kind or "v5e" in kind or "v5lite" in kind:
        return 4 << 20          # ~0.8 TB/s HBM: per-step overhead already small
    return 8 << 20              # v6e / v7x / default: fast HBM, go big


def _as_2d(x, n):
    """Return a 2-D, copy-/pad-free (rows, lanes) view of x for the kernel."""
    last = x.shape[-1] if x.ndim >= 1 else 1
    if x.ndim >= 2 and last % 128 == 0:
        return x.reshape(n // last, last)           # keep the natural lane dim
    if n % 128 == 0:
        for lane in _LANE_CANDIDATES:
            if n % lane == 0:
                return x.reshape(n // lane, lane)   # lane-dense re-slab
    # Awkward shape: full-extent lane block (masked stores if last < 128,
    # but still no padding and no extra HBM pass).
    if x.ndim >= 2:
        return x.reshape(n // last, last)
    return x.reshape(1, n)


def _block_geometry(rows, lanes, itemsize, target_bytes):
    """Pick (tile_r, tile_c) obeying TPU tiling rules with no padding needed."""
    sub = _SUBLANE_MULT.get(itemsize, 8)

    # Lane-dim block: full extent unless even a `sub`-row strip would blow
    # the byte budget; then a big multiple of 128 (ragged tail is masked).
    if lanes <= 128 or lanes * itemsize * min(rows, sub) <= target_bytes:
        tile_c = lanes
    else:
        tile_c = max(128, (target_bytes // (min(rows, sub) * itemsize)) // 128 * 128)

    # Row-dim block: fill the byte budget, rounded to the dtype's sublane
    # multiple; aim for >=4 grid steps on mid-size inputs so neighbouring
    # blocks' DMAs overlap (double-buffered pipeline, 2 blocks/TC on v7x).
    if rows <= sub:
        tile_r = rows                               # full-extent (always legal)
    else:
        budget_r = max(sub, target_bytes // (tile_c * itemsize))
        quarter = pl.cdiv(pl.cdiv(rows, 4), sub) * sub
        tile_r = max(sub, min(budget_r, quarter) // sub * sub)
    return tile_r, tile_c


def gelu_pallas(x):
    """Elementwise tanh-approx GELU matching the PyTorch reference."""
    orig_shape = x.shape
    n = math.prod(orig_shape) if orig_shape else 1
    if n == 0:
        return x

    x2d = _as_2d(x, n)
    rows, lanes = x2d.shape
    itemsize = jnp.dtype(x.dtype).itemsize

    tile_r, tile_c = _block_geometry(rows, lanes, itemsize, _target_block_bytes())
    grid = (pl.cdiv(rows, tile_r), pl.cdiv(lanes, tile_c))

    # Double-buffered (in + out) blocks must fit the scoped-VMEM budget;
    # only raise the limit when the defaults (16/32 MiB) would be exceeded.
    block_bytes = tile_r * tile_c * itemsize
    vmem_need = 4 * block_bytes + (4 << 20)
    vmem_limit = None
    if vmem_need > (16 << 20):
        vmem_limit = min(48 << 20, max(24 << 20, vmem_need))

    cost = pl.CostEstimate(
        flops=8 * n, transcendentals=n, bytes_accessed=2 * n * itemsize
    )

    out2d = pl.pallas_call(
        _gelu_kernel,
        out_shape=jax.ShapeDtypeStruct((rows, lanes), x.dtype),
        grid=grid,
        in_specs=[pl.BlockSpec((tile_r, tile_c), lambda i, j: (i, j))],
        out_specs=pl.BlockSpec((tile_r, tile_c), lambda i, j: (i, j)),
        compiler_params=pltpu.CompilerParams(
            dimension_semantics=("parallel", "parallel"),
            vmem_limit_bytes=vmem_limit,
        ),
        cost_estimate=cost,
    )(x2d)

    return out2d.reshape(orig_shape)


def gelu_ref(x):
    c = jnp.sqrt(jnp.asarray(2.0 / math.pi, dtype=jnp.float32)).astype(x.dtype)
    return 0.5 * x * (1.0 + jnp.tanh(c * (x + 0.044715 * jnp.power(x, 3))))


if __name__ == "__main__":
    key = jax.random.PRNGKey(0)
    # batch=2, seq=8, hidden=32 (module is shape-agnostic elementwise)
    x = jax.random.normal(key, (2, 8, 32), dtype=jnp.float32)

    out = gelu_pallas(x)
    jax.block_until_ready(out)

    ref = gelu_ref(x)
    assert out.shape == x.shape and out.dtype == x.dtype
    assert jnp.allclose(out, ref, atol=1e-5, rtol=1e-5), "mismatch vs reference"
    print("KERNEL_OK")
</pallas_src>

<mosaic_0001>
module attributes {stable_mosaic.version = 11 : i64} {
  func.func @_gelu_kernel(%arg0: i32, %arg1: i32, %arg2: memref<1x512xf32, #tpu.memory_space<vmem>>, %arg3: memref<1x512xf32, #tpu.memory_space<vmem>>) attributes {dimension_semantics = [#tpu.dimension_semantics<parallel>, #tpu.dimension_semantics<parallel>], iteration_bounds = array<i64: 1, 1>, scalar_prefetch = 0 : i64, scratch_operands = 0 : i64, tpu.core_type = #tpu.core_type<tc>, window_params = [{transform_indices = @transform_0, window_bounds = array<i64: 1, 512>}, {transform_indices = @transform_1, window_bounds = array<i64: 1, 512>}]} {
    %c0 = arith.constant 0 : index
    %c0_0 = arith.constant 0 : index
    %0 = vector.load %arg2[%c0, %c0_0] : memref<1x512xf32, #tpu.memory_space<vmem>>, vector<1x512xf32>
    %1 = arith.mulf %0, %0 : vector<1x512xf32>
    %2 = arith.mulf %1, %0 : vector<1x512xf32>
    %cst = arith.constant 4.471500e-02 : f32
    %3 = vector.broadcast %cst : f32 to vector<1x512xf32>
    %4 = arith.mulf %3, %2 : vector<1x512xf32>
    %5 = arith.addf %0, %4 : vector<1x512xf32>
    %cst_1 = arith.constant 0.797884583 : f32
    %6 = vector.broadcast %cst_1 : f32 to vector<1x512xf32>
    %7 = arith.mulf %6, %5 : vector<1x512xf32>
    %cst_2 = arith.constant 5.000000e-01 : f32
    %8 = vector.broadcast %cst_2 : f32 to vector<1x512xf32>
    %9 = arith.mulf %8, %0 : vector<1x512xf32>
    %10 = math.tanh %7 : vector<1x512xf32>
    %cst_3 = arith.constant 1.000000e+00 : f32
    %11 = vector.broadcast %cst_3 : f32 to vector<1x512xf32>
    %12 = arith.addf %11, %10 : vector<1x512xf32>
    %13 = arith.mulf %9, %12 : vector<1x512xf32>
    %c0_4 = arith.constant 0 : index
    %c0_5 = arith.constant 0 : index
    %14 = vector.load %arg3[%c0_4, %c0_5] : memref<1x512xf32, #tpu.memory_space<vmem>>, vector<1x512xf32>
    tpu.vector_store %arg3[%c0_4, %c0_5], %13 {strides = array<i32>} : memref<1x512xf32, #tpu.memory_space<vmem>>, vector<1x512xf32>,
    return
  }
  func.func @transform_0(%arg0: i32, %arg1: i32) -> (i32, i32) {
    %c0_i32 = arith.constant 0 : i32
    return %arg0, %arg1 : i32, i32
  }
  func.func @transform_1(%arg0: i32, %arg1: i32) -> (i32, i32) {
    %c0_i32 = arith.constant 0 : i32
    return %arg0, %arg1 : i32, i32
  }
}

</mosaic_0001>

<bundles_post_ra>
// kernel: tpu_custom_call.1
= control target key start
LH: loop header
LB: loop body
LE: loop exit
PB: predicated region body
PF: predicated region fallthrough
CT: control target
= control target key end

     0   :  { %6 = vsyncpa [#allocation3], 0  ;;  %s117_s0 = inlined_call_operand.hbm [shape: f32[1,512], index: 0, kind: input, shape index: {}]   ;;  %s118_s1 = inlined_call_operand.hbm [shape: f32[1,512], index: 1, kind: output, shape index: {}]  }
   0x1   :  { %7 = vsyncpa [#allocation4], 0  ;;  %s99_s6 = smov [#allocation2]  }
   0x2   :  { %s14_s7 = sshll.u32 %s99_s6, 4  ;;  %s15_s7 = int_to_ptr.vmem [resolvable:$true] %s14_s7 }
   0x3   :  { %s63_s8 = scalar_lea.vmem %s15_s7, 64  ;;  %p68_p1 = scmp.lt.s32.totalorder %s15_s7, %s15_s7 }
   0x4   :  { %p64_p0 = scmp.ne.s32.totalorder %s15_s7, %s63_s8  ;;  %p69_p2 = scmp.lt.s32.totalorder %s63_s8, %s63_s8 }
   0x6   :  { %p70_p3 = por %p69_p2, %p68_p1 }
   0x8   :  { %p71_p4 = pnand %p70_p3, %p64_p0 }
   0xa   :  { %74 = shalt.err (!%p71_p4)
}
   0xb   :  { %17 = dma.hbm_to_vmem [thread:$0]  %s117_s0, 64, %s15_s7, [#allocation3]  }
   0xc   :  { %95 = dma.done.wait [#allocation3], 64  }
   0xd   :  { %96 = vsyncadd [#allocation3], 4294967232  ;;  %v21_v0 = vld [vmem:[#allocation2] sm:$0xf]  ;;  %v31_v6 = vlaneseq  ;;  %s100_s11 = smov [#allocation5]  }
   0xe   :  { %v22_v1 = vmul.f32 %v21_v0, %v21_v0  ;;  %v27_v7 = vmul.f32 0.5, %v21_v0  ;;  %s42_s12 = sshll.u32 %s100_s11, 4  ;;  %s43_s12 = int_to_ptr.vmem [resolvable:$true] %s42_s12 }
   0xf   :  { %vm33_vm0 = vcmp.lt.s32.totalorder %v31_v6, 512  ;;  %s75_s0 = scalar_lea.vmem %s43_s12, 64  ;;  %p80_p6 = scmp.lt.s32.totalorder %s43_s12, %s43_s12 }
  0x10   :  { %v23_v2 = vmul.f32 %v22_v1, %v21_v0  ;;  %p76_p5 = scmp.ne.s32.totalorder %s43_s12, %s75_s0  ;;  %p81_p7 = scmp.lt.s32.totalorder %s75_s0, %s75_s0 }
  0x12   :  { %v24_v3 = vmul.f32 0.044715, %v23_v2  ;;  %p82_p8 = por %p81_p7, %p80_p6 }
  0x14   :  { %v25_v4 = vadd.f32 %v24_v3, %v21_v0  ;;  %p83_p9 = pnand %p82_p8, %p76_p5 }
  0x16   :  { %v26_v5 = vmul.f32 0.7978846, %v25_v4 }
  0x18   :  { %53 = vtanh.f32 %v26_v5 }
  0x25   :  { %v54_v8 = vpop.eup %53 }
  0x26   :  { %v29_v9 = vadd.f32 1.0, %v54_v8 }
  0x28   :  { %v30_v10 = vmul.f32 %v29_v9, %v27_v7 }
  0x2a   :  { %35 = vst.msk [vmem:[#allocation5] sm:$0xf] %vm33_vm0, %v30_v10 }
  0x2b   :  { %86 = shalt.err (!%p83_p9)
}
  0x2c   :  { %45 = dma.vmem_to_hbm [thread:$0]  %s43_s12, 64, %s118_s1, [#allocation4]  }
  0x2d   :  { %97 = dma.done.wait [#allocation4], 64  }
  0x2e   :  { %98 = vsyncadd [#allocation4], 4294967232 }
  0x2f   :  { %49 = vsyncpa [#allocation3], 1 }
  0x30   :  { %50 = vsyncpa [#allocation4], 1 }

</bundles_post_ra>
